<compile_context>
chip_gen: v7x
topology: tpu7x:2x2x1
jax: 0.10.0
libtpu: 0.0.40
codegen_flags: <defaults>
</compile_context>

<pallas_src>
import functools

import jax
import jax.numpy as jnp
from jax.experimental import pallas as pl
from jax.experimental.pallas import tpu as pltpu


def _round_up(n, m):
    return ((n + m - 1) // m) * m


# ---------------------------------------------------------------------------
# Kernel: one fused matmul + bias + sigmoid per batch tile.
# ---------------------------------------------------------------------------
def fused_net_kernel(x_ref, w_ref, b_ref, o_ref):
    # (TB, E) @ (E, S) with f32 accumulation on the MXU, bias add on the VPU.
    y = jnp.dot(x_ref[...], w_ref[...],
                preferred_element_type=jnp.float32) + b_ref[...]
    # Sigmoid epilogue in f32 (exp goes to the otherwise-idle EUP slot).
    o_ref[...] = jax.nn.sigmoid(y).astype(o_ref.dtype)


# ---------------------------------------------------------------------------
# One-time parameter preparation (outside the hot jit): fuse the two Linears.
# Exact algebra: sigmoid((x@W1 + b1)@W2 + b2) == sigmoid(x@(W1@W2) + (b1@W2 + b2))
# ---------------------------------------------------------------------------
def prepare_params(w1, b1, w2, b2):
    w = jnp.dot(w1, w2, preferred_element_type=jnp.float32)
    b = jnp.dot(b1, w2, preferred_element_type=jnp.float32) + b2
    return w.astype(jnp.float32), b.astype(jnp.float32)


def _choose_tile(batch, entrada, salida, tb_max=1024, vmem_budget_bytes=24 << 20):
    """Pick the batch tile (trace-time Python ints only)."""
    # v7x-safe VMEM budget: double-buffered f32 x tile + double-buffered out tile.
    bytes_per_row = 2 * 4 * (entrada + salida)
    tb_cap = max(8, (vmem_budget_bytes // max(bytes_per_row, 1)) // 8 * 8)
    # Ensure >=2 grid steps when batch is larger than one tile so the
    # "parallel" grid axis can use both TensorCores on v7x.
    tb_half = max(8, _round_up(-(-batch // 2), 8))
    tb = min(tb_max, tb_cap, tb_half)
    # Never larger than the (8-aligned) batch itself.
    return max(8, min(tb, _round_up(batch, 8)))


@functools.partial(jax.jit, static_argnames=("tb",))
def _net_forward_impl(x, w_fused, b_fused, *, tb):
    batch, entrada = x.shape
    salida = w_fused.shape[1]
    grid = (pl.cdiv(batch, tb),)   # ragged last block handled by Pallas

    return pl.pallas_call(
        fused_net_kernel,
        out_shape=jax.ShapeDtypeStruct((batch, salida), jnp.float32),
        grid=grid,
        in_specs=[
            pl.BlockSpec((tb, entrada), lambda i: (i, 0)),      # x: batch-tiled
            pl.BlockSpec((entrada, salida), lambda i: (0, 0)),  # fused W: resident
            pl.BlockSpec((1, salida), lambda i: (0, 0)),        # fused b: resident
        ],
        out_specs=pl.BlockSpec((tb, salida), lambda i: (i, 0)),
        compiler_params=pltpu.CompilerParams(
            dimension_semantics=("parallel",),  # shards batch tiles across TCs on v7x
        ),
    )(x, w_fused, b_fused)


def net_forward(x, w_fused, b_fused):
    """Forward pass of Net with pre-fused params (from prepare_params)."""
    batch, entrada = x.shape
    salida = w_fused.shape[1]
    tb = _choose_tile(batch, entrada, salida)
    return _net_forward_impl(x, w_fused, b_fused, tb=tb)


def init_params(key, entrada, salida, hidden=100):
    """Deterministic init mimicking nn.Linear's U(-1/sqrt(fan_in), 1/sqrt(fan_in)).

    Weights are stored pre-transposed as (in_features, out_features).
    """
    k1, k2, k3, k4 = jax.random.split(key, 4)
    s1 = float(entrada) ** -0.5
    s2 = float(hidden) ** -0.5
    w1 = jax.random.uniform(k1, (entrada, hidden), jnp.float32, -s1, s1)
    b1 = jax.random.uniform(k2, (1, hidden), jnp.float32, -s1, s1)
    w2 = jax.random.uniform(k3, (hidden, salida), jnp.float32, -s2, s2)
    b2 = jax.random.uniform(k4, (1, salida), jnp.float32, -s2, s2)
    return w1, b1, w2, b2


if __name__ == "__main__":
    key = jax.random.PRNGKey(0)
    kx, kp = jax.random.split(key)

    batch, entrada, salida = 8, 32, 8
    x = jax.random.normal(kx, (batch, entrada), jnp.float32)
    w1, b1, w2, b2 = init_params(kp, entrada, salida, hidden=100)

    # One-time parameter fusion (outside the hot path).
    w_fused, b_fused = prepare_params(w1, b1, w2, b2)

    out = net_forward(x, w_fused, b_fused)
    jax.block_until_ready(out)

    # Reference check against the original (unfused) two-Linear + Sigmoid form.
    ref = jax.nn.sigmoid((x @ w1 + b1) @ w2 + b2)
    assert out.shape == (batch, salida)
    assert jnp.allclose(out, ref, atol=2e-5, rtol=1e-4), float(
        jnp.max(jnp.abs(out - ref)))

    print("KERNEL_OK")
</pallas_src>

<mosaic_0001>
module attributes {stable_mosaic.version = 11 : i64} {
  func.func @fused_net_kernel(%arg0: i32, %arg1: memref<8x32xf32, #tpu.memory_space<vmem>>, %arg2: memref<32x8xf32, #tpu.memory_space<vmem>>, %arg3: memref<1x8xf32, #tpu.memory_space<vmem>>, %arg4: memref<8x8xf32, #tpu.memory_space<vmem>>) attributes {dimension_semantics = [#tpu.dimension_semantics<parallel>], iteration_bounds = array<i64: 1>, scalar_prefetch = 0 : i64, scratch_operands = 0 : i64, tpu.core_type = #tpu.core_type<tc>, window_params = [{transform_indices = @transform_0, window_bounds = array<i64: 8, 32>}, {pipeline_mode = #tpu.pipeline_mode<synchronous>, transform_indices = @transform_1, window_bounds = array<i64: 32, 8>}, {pipeline_mode = #tpu.pipeline_mode<synchronous>, transform_indices = @transform_2, window_bounds = array<i64: 1, 8>}, {transform_indices = @transform_3, window_bounds = array<i64: 8, 8>}]} {
    %c0 = arith.constant 0 : index
    %c0_0 = arith.constant 0 : index
    %0 = vector.load %arg1[%c0, %c0_0] : memref<8x32xf32, #tpu.memory_space<vmem>>, vector<8x32xf32>
    %c0_1 = arith.constant 0 : index
    %c0_2 = arith.constant 0 : index
    %1 = vector.load %arg2[%c0_1, %c0_2] : memref<32x8xf32, #tpu.memory_space<vmem>>, vector<32x8xf32>
    %cst = arith.constant dense<0.000000e+00> : vector<8x8xf32>
    %2 = tpu.matmul %0, %1, %cst {dimension_numbers = #tpu.dot_dimension_numbers<[1], [0], [0], [1], [0, 0, 1, 1], [], []>} : vector<8x32xf32>, vector<32x8xf32>, vector<8x8xf32> -> vector<8x8xf32>
    %c0_3 = arith.constant 0 : index
    %c0_4 = arith.constant 0 : index
    %3 = vector.load %arg3[%c0_3, %c0_4] : memref<1x8xf32, #tpu.memory_space<vmem>>, vector<1x8xf32>
    %4 = vector.broadcast %3 : vector<1x8xf32> to vector<8x8xf32>
    %5 = arith.addf %2, %4 : vector<8x8xf32>
    %6 = arith.negf %5 : vector<8x8xf32>
    %7 = math.exp %6 : vector<8x8xf32>
    %cst_5 = arith.constant 1.000000e+00 : f32
    %8 = vector.broadcast %cst_5 : f32 to vector<8x8xf32>
    %9 = arith.addf %8, %7 : vector<8x8xf32>
    %10 = arith.divf %8, %9 : vector<8x8xf32>
    %c0_6 = arith.constant 0 : index
    %c0_7 = arith.constant 0 : index
    %11 = vector.load %arg4[%c0_6, %c0_7] : memref<8x8xf32, #tpu.memory_space<vmem>>, vector<8x8xf32>
    tpu.vector_store %arg4[%c0_6, %c0_7], %10 {strides = array<i32>} : memref<8x8xf32, #tpu.memory_space<vmem>>, vector<8x8xf32>,
    return
  }
  func.func @transform_0(%arg0: i32) -> (i32, i32) {
    %c0_i32 = arith.constant 0 : i32
    %c0_i32_0 = arith.constant 0 : i32
    return %arg0, %c0_i32 : i32, i32
  }
  func.func @transform_1(%arg0: i32) -> (i32, i32) {
    %c0_i32 = arith.constant 0 : i32
    %c0_i32_0 = arith.constant 0 : i32
    %c0_i32_1 = arith.constant 0 : i32
    return %c0_i32, %c0_i32_0 : i32, i32
  }
  func.func @transform_2(%arg0: i32) -> (i32, i32) {
    %c0_i32 = arith.constant 0 : i32
    %c0_i32_0 = arith.constant 0 : i32
    %c0_i32_1 = arith.constant 0 : i32
    return %c0_i32, %c0_i32_0 : i32, i32
  }
  func.func @transform_3(%arg0: i32) -> (i32, i32) {
    %c0_i32 = arith.constant 0 : i32
    %c0_i32_0 = arith.constant 0 : i32
    return %arg0, %c0_i32 : i32, i32
  }
}

</mosaic_0001>

<bundles_post_ra>
// kernel: _net_forward_impl.1
= control target key start
LH: loop header
LB: loop body
LE: loop exit
PB: predicated region body
PF: predicated region fallthrough
CT: control target
= control target key end

     0   :  { %v180_v3 = vmov 0.0|0.0   ;;  %vm181_vm0 = vmmov 0   ;;  %v182_v6 = vmov 0.0   ;;  %s234_s0 = inlined_call_operand.vmem [shape: f32[8,32], index: 0, kind: input, shape index: {}]   ;;  %s235_s1 = inlined_call_operand.vmem [shape: f32[32,8], index: 1, kind: input, shape index: {}]   ;;  %s236_s2 = inlined_call_operand.vmem [shape: f32[1,8], index: 2, kind: input, shape index: {}]   ;;  %s237_s3 = inlined_call_operand.hbm [shape: f32[8,8], index: 3, kind: output, shape index: {}]  }
   0x1   :  { %v16_v0 = vld [vmem:[%s235_s1] sm:$0xff]  ;;  %v17_v1 = vld [vmem:[%s235_s1 + $0x8] sm:$0xff]  ;;  %v18_v2 = vld [vmem:[%s235_s1 + $0x10] sm:$0xff]  ;;  %142 = vmatprep.subr.bf16.mxu0 %v180_v3  ;;  %139 = vmatprep.mubr.msk.f32.mxu0 %vm181_vm0, %v182_v6 }
   0x2   :  { %v143_v4 = vpack.c.bf16 %v17_v1, %v16_v0  ;;  %v19_v5 = vld [vmem:[%s235_s1 + $0x18] sm:$0xff] }
   0x3   :  { %8 = vsyncpa [#allocation3], 0  ;;  %v146_v7 = vpack.c.bf16 %v19_v5, %v18_v2  ;;  %v15_v8 = vld [vmem:[%s234_s0] sm:$0xff]  ;;  %vm27_vm1 = vcmask 261120   ;;  %s183_s1 = smov [#allocation2]   ;;  %vm107_vm2 = vcmask 64512  }
   0x4   :  { %144 = vmatpush3.bf16.msra.mxu0 %v143_v4  ;;  %v123_v9 = vld [vmem:[%s236_s2] ss:$0 sm:$0xff]  ;;  %s115_s24 = sshll.u32 %s183_s1, 4  ;;  %s116_s24 = int_to_ptr.vmem [resolvable:$true] %s115_s24 }
   0x5   :  { %145 = vmatprep.subr.bf16.mxu0 %v180_v3  ;;  %s156_s0 = scalar_lea.vmem %s116_s24, 128  ;;  %p161_p1 = scmp.lt.s32.totalorder %s116_s24, %s116_s24 }
   0x6   :  { %p157_p0 = scmp.ne.s32.totalorder %s116_s24, %s156_s0  ;;  %p162_p2 = scmp.lt.s32.totalorder %s156_s0, %s156_s0 }
   0x8   :  { %147 = vmatpush3.bf16.msra.mxu0 %v146_v7  ;;  %p163_p3 = por %p162_p2, %p161_p1 }
   0xa   :  { %p164_p4 = pnand %p163_p3, %p157_p0 }
   0xb   :  { %140 = vmatmul.mubr.msk.f32.vlgmr.msra.gmra.mrb[0].mxu0 %vm27_vm1, %v15_v8 }
  0xde   :  { %v97_v10 = vpop.f32.mrb[0].mxu0 }
  0xdf   :  { %v98_v11 = vadd.f32 %v123_v9, %v97_v10  ;;  %v141_v12 = vpop.f32.mrb[1].mxu0 }
  0xe1   :  { %v125_v13 = vmul.f32 -1.442695, %v98_v11 }
  0xe3   :  { %152 = vpow2.f32 %v125_v13 }
  0xed   :  { %v153_v14 = vpop.eup %152 }
  0xee   :  { %v104_v15 = vadd.f32 1.0, %v153_v14 }
  0xf0   :  { %154 = vrcp.f32 %v104_v15 }
  0xfa   :  { %v155_v16 = vpop.eup %154 }
  0xfb   :  { %108 = vst.msk [vmem:[#allocation2] sm:$0xff] %vm107_vm2, %v155_v16 }
  0xfc   :  { %167 = shalt.err (!%p164_p4)
}
  0xfd   :  { %s168_s26 = scalar_lea.hbm %s237_s3, 128 }
  0xfe   :  { %p169_p5 = scmp.ne.s32.totalorder %s237_s3, %s168_s26  ;;  %p172_p6 = scmp.lt.u32.totalorder %s168_s26, %s237_s3 }
 0x100   :  { %p174_p7 = pnand %p172_p6, %p169_p5 }
 0x102   :  { %177 = shalt.err (!%p174_p7)
}
 0x103   :  { %118 = dma.vmem_to_hbm [thread:$0]  %s116_s24, 128, %s237_s3, [#allocation3]  }
 0x104   :  { %178 = dma.done.wait [#allocation3], 128  }
 0x105   :  { %179 = vsyncadd [#allocation3], 4294967168 }
 0x106   :  { %122 = vsyncpa [#allocation3], 1 }

</bundles_post_ra>
